<compile_context>
chip_gen: v7x
topology: tpu7x:2x2x1
jax: 0.10.0
libtpu: 0.0.40
codegen_flags: <defaults>
</compile_context>

<pallas_src>
import functools

import jax
import jax.numpy as jnp
from jax.experimental import pallas as pl
from jax.experimental.pallas import tpu as pltpu


def se_bottleneck_kernel(x_ref, w1_ref, b1_ref, w2_ref, b2_ref,
                         w3_ref, b3_ref, fc1_ref, fc2_ref, out_ref,
                         *, seg_len: int, num_segs: int):
    """One grid step = `num_segs` batch elements merged along the lane axis.

    x_ref  : (1, Cin, N)      f32 input (identity path), N = num_segs*seg_len
    w1_ref : (W,   Cin)       conv1 1x1 weight, bn1 scale folded in   (cdt)
    b1_ref : (W, 1)           folded bn1 shift (f32)
    w2_ref : (W, 3*W)         conv2 1x3 weight (tap-major on K), bn2 folded (cdt)
    b2_ref : (W, 1)           folded bn2 shift (f32)
    w3_ref : (Cexp, W)        conv3 1x1 weight, bn3 scale folded in   (cdt)
    b3_ref : (Cexp, 1)        folded bn3 shift (f32)
    fc1_ref: (Cr, Cexp)       SE squeeze linear (f32)
    fc2_ref: (Cexp, Cr)       SE excite linear  (f32)
    out_ref: (1, Cexp, N)     f32 output
    """
    L = seg_len
    N = seg_len * num_segs
    cdt = w1_ref.dtype                               # MXU compute dtype

    # ---- conv1 (1x1) + folded bn1 + relu:  single (W, Cin) @ (Cin, N) ----
    x_c = x_ref[0].astype(cdt)                       # cast only the matmul operand
    h1 = jnp.dot(w1_ref[...], x_c, preferred_element_type=jnp.float32)
    h1 = jnp.maximum(h1 + b1_ref[...], 0.0)          # (W, N) f32

    # ---- conv2 (1x3, pad=1) as one K=3W matmul (im2col along sublanes) ----
    # +/-1 taps via XLU roll (non-negative shifts only).  Taps at every
    # batch-segment boundary are zeroed so merged segments do not leak.
    lane = jax.lax.broadcasted_iota(jnp.int32, h1.shape, 1)
    left_edge = jnp.zeros(h1.shape, jnp.bool_)
    right_edge = jnp.zeros(h1.shape, jnp.bool_)
    for s in range(num_segs):
        left_edge = jnp.logical_or(left_edge, lane == s * L)
        right_edge = jnp.logical_or(right_edge, lane == s * L + L - 1)
    left = jnp.where(left_edge, 0.0, pltpu.roll(h1, shift=1, axis=1))
    right = jnp.where(right_edge, 0.0, pltpu.roll(h1, shift=N - 1, axis=1))
    # Build the (3W, N) im2col buffer directly in the compute dtype.
    col = jnp.concatenate(
        [left.astype(cdt), h1.astype(cdt), right.astype(cdt)], axis=0)
    h2 = jnp.dot(w2_ref[...], col, preferred_element_type=jnp.float32)
    h2 = jnp.maximum(h2 + b2_ref[...], 0.0)          # (W, N) f32

    # ---- conv3 (1x1) + folded bn3 ----
    h3 = jnp.dot(w3_ref[...], h2.astype(cdt), preferred_element_type=jnp.float32)
    h3 = h3 + b3_ref[...]                            # (Cexp, N) f32

    # ---- SE gate + residual + relu, per batch segment (static unroll) ----
    # SE matmuls are tiny N=1 dots: kept in f32 (no casts).  The identity is
    # re-read from x_ref here instead of being held live across conv2.
    for s in range(num_segs):
        sl = slice(s * L, (s + 1) * L)
        seg = h3[:, sl]                               # (Cexp, L) f32
        pooled = jnp.mean(seg, axis=1, keepdims=True)  # (Cexp, 1)
        z = jnp.maximum(
            jnp.dot(fc1_ref[...], pooled, preferred_element_type=jnp.float32),
            0.0)                                      # (Cr, 1)
        gate = jax.nn.sigmoid(
            jnp.dot(fc2_ref[...], z, preferred_element_type=jnp.float32))
        out = jnp.maximum(seg * gate + x_ref[0, :, sl], 0.0)
        out_ref[0, :, sl] = out.astype(out_ref.dtype)


def _pick_batch_tile(B, L):
    """Largest divisor of B s.t. N = bt*L <= 512 while keeping >=2 grid steps
    (both v7x TensorCores busy) whenever B >= 2."""
    best = 1
    for bt in range(1, B + 1):
        if B % bt:
            continue
        if B >= 2 and B // bt < 2:
            continue
        if bt * L <= 512:
            best = bt
    return best


def se_bottleneck(x, params, *, compute_dtype=jnp.bfloat16, batch_tile=None):
    """x: (B, C, L) float32, NCL like PyTorch. Returns (B, Cexp, L) float32."""
    B, Cin, L = x.shape
    w1 = params["conv1_w"]             # (W,    Cin, 1)
    w2 = params["conv2_w"]             # (W,    W,   3)
    w3 = params["conv3_w"]             # (Cexp, W,   1)
    W = w1.shape[0]
    Cexp = w3.shape[0]
    fc1 = params["fc1_w"]              # (Cr, Cexp)
    fc2 = params["fc2_w"]              # (Cexp, Cr)
    Cr = fc1.shape[0]
    eps = 1e-5

    # stride=1 / downsample=None restriction of this kernel.
    assert Cin == Cexp, "downsample=None requires inplanes == planes*expansion"
    # Lane-dense stores: require L to be a multiple of 128.
    # TODO(synk): pad + in-kernel length masking path for arbitrary L.
    assert L % 128 == 0, "L must be a multiple of 128"

    Bt = batch_tile if batch_tile is not None else _pick_batch_tile(B, L)
    assert B % Bt == 0, "batch_tile must divide B"
    G = B // Bt
    N = Bt * L

    # Fold BN (eval mode) into conv weights (scale) + per-channel shift.
    s1 = params["bn1_gamma"] / jnp.sqrt(params["bn1_var"] + eps)
    b1 = params["bn1_beta"] - params["bn1_mean"] * s1
    s2 = params["bn2_gamma"] / jnp.sqrt(params["bn2_var"] + eps)
    b2 = params["bn2_beta"] - params["bn2_mean"] * s2
    s3 = params["bn3_gamma"] / jnp.sqrt(params["bn3_var"] + eps)
    b3 = params["bn3_beta"] - params["bn3_mean"] * s3

    w1_eff = w1[:, :, 0] * s1[:, None]                            # (W, Cin)
    # tap-major K layout: [tap0 | tap1 | tap2], each block of W input channels
    w2_flat = jnp.transpose(w2, (0, 2, 1)).reshape(W, 3 * W)
    w2_eff = w2_flat * s2[:, None]                                # (W, 3W)
    w3_eff = w3[:, :, 0] * s3[:, None]                            # (Cexp, W)

    cdt = compute_dtype

    # Merge `Bt` batch elements into the lane axis (skipped when Bt == 1 so
    # the common case does no extra HBM pass over x).
    if Bt == 1:
        x_in = x
    else:
        x_in = x.reshape(G, Bt, Cin, L).transpose(0, 2, 1, 3).reshape(G, Cin, N)

    kernel = functools.partial(se_bottleneck_kernel, seg_len=L, num_segs=Bt)
    full = lambda shape: pl.BlockSpec(shape, lambda g, _s=shape: (0,) * len(_s))

    out = pl.pallas_call(
        kernel,
        out_shape=jax.ShapeDtypeStruct((G, Cexp, N), jnp.float32),
        grid_spec=pltpu.PrefetchScalarGridSpec(
            num_scalar_prefetch=0,
            grid=(G,),
            in_specs=[
                pl.BlockSpec((1, Cin, N), lambda g: (g, 0, 0)),
                full((W, Cin)), full((W, 1)),
                full((W, 3 * W)), full((W, 1)),
                full((Cexp, W)), full((Cexp, 1)),
                full((Cr, Cexp)), full((Cexp, Cr)),
            ],
            out_specs=pl.BlockSpec((1, Cexp, N), lambda g: (g, 0, 0)),
        ),
        compiler_params=pltpu.CompilerParams(
            dimension_semantics=("parallel",)),
    )(x_in,                                            # f32, no wrapper cast
      w1_eff.astype(cdt), b1[:, None].astype(jnp.float32),
      w2_eff.astype(cdt), b2[:, None].astype(jnp.float32),
      w3_eff.astype(cdt), b3[:, None].astype(jnp.float32),
      fc1.astype(jnp.float32), fc2.astype(jnp.float32))

    if Bt != 1:
        out = out.reshape(G, Cexp, Bt, L).transpose(0, 2, 1, 3).reshape(B, Cexp, L)
    return out


# ------------------------- pure-JAX reference -------------------------
def ref_forward(x, params):
    eps = 1e-5
    hi = jax.lax.Precision.HIGHEST

    def conv(x_ncl, w, pad):
        return jax.lax.conv_general_dilated(
            x_ncl, w, window_strides=(1,), padding=((pad, pad),),
            dimension_numbers=("NCH", "OIH", "NCH"), precision=hi)

    def bn(h, g, b, m, v):
        return g[None, :, None] * (h - m[None, :, None]) / \
            jnp.sqrt(v[None, :, None] + eps) + b[None, :, None]

    out = conv(x, params["conv1_w"], 0)
    out = jnp.maximum(bn(out, params["bn1_gamma"], params["bn1_beta"],
                         params["bn1_mean"], params["bn1_var"]), 0.0)
    out = conv(out, params["conv2_w"], 1)
    out = jnp.maximum(bn(out, params["bn2_gamma"], params["bn2_beta"],
                         params["bn2_mean"], params["bn2_var"]), 0.0)
    out = conv(out, params["conv3_w"], 0)
    out = bn(out, params["bn3_gamma"], params["bn3_beta"],
             params["bn3_mean"], params["bn3_var"])
    # SE
    y = jnp.mean(out, axis=2)                                    # (B, Cexp)
    y = jnp.maximum(jnp.matmul(y, params["fc1_w"].T, precision=hi), 0.0)
    y = jax.nn.sigmoid(jnp.matmul(y, params["fc2_w"].T, precision=hi))
    out = out * y[:, :, None]
    out = jnp.maximum(out + x, 0.0)
    return out


if __name__ == "__main__":
    # SEBottleneck(inplanes=64, planes=32): width=32, expansion=2 -> Cexp=64,
    # reduction=16 -> Cr=4.  L=128 keeps the lane axis dense.
    B, PLANES, L = 2, 32, 128
    W = PLANES                     # base_width=32, groups=1
    CEXP = PLANES * 2              # expansion = 2
    CIN = CEXP                     # downsample=None => inplanes == Cexp
    CR = CEXP // 16                # reduction = 16

    key = jax.random.PRNGKey(0)
    ks = jax.random.split(key, 20)
    params = {
        "conv1_w": jax.random.normal(ks[0], (W, CIN, 1), jnp.float32) * 0.1,
        "conv2_w": jax.random.normal(ks[1], (W, W, 3), jnp.float32) * 0.1,
        "conv3_w": jax.random.normal(ks[2], (CEXP, W, 1), jnp.float32) * 0.1,
        "bn1_gamma": 1.0 + 0.1 * jax.random.normal(ks[3], (W,), jnp.float32),
        "bn1_beta": 0.1 * jax.random.normal(ks[4], (W,), jnp.float32),
        "bn1_mean": 0.05 * jax.random.normal(ks[5], (W,), jnp.float32),
        "bn1_var": jnp.abs(1.0 + 0.1 * jax.random.normal(ks[6], (W,), jnp.float32)),
        "bn2_gamma": 1.0 + 0.1 * jax.random.normal(ks[7], (W,), jnp.float32),
        "bn2_beta": 0.1 * jax.random.normal(ks[8], (W,), jnp.float32),
        "bn2_mean": 0.05 * jax.random.normal(ks[9], (W,), jnp.float32),
        "bn2_var": jnp.abs(1.0 + 0.1 * jax.random.normal(ks[10], (W,), jnp.float32)),
        "bn3_gamma": 1.0 + 0.1 * jax.random.normal(ks[11], (CEXP,), jnp.float32),
        "bn3_beta": 0.1 * jax.random.normal(ks[12], (CEXP,), jnp.float32),
        "bn3_mean": 0.05 * jax.random.normal(ks[13], (CEXP,), jnp.float32),
        "bn3_var": jnp.abs(1.0 + 0.1 * jax.random.normal(ks[14], (CEXP,), jnp.float32)),
        "fc1_w": jax.random.normal(ks[15], (CR, CEXP), jnp.float32) * 0.2,
        "fc2_w": jax.random.normal(ks[16], (CEXP, CR), jnp.float32) * 0.2,
    }

    x = jax.random.normal(jax.random.PRNGKey(42), (B, CIN, L), jnp.float32)
    ref = jax.block_until_ready(ref_forward(x, params))

    # Default path: bf16 MXU operands, f32 accumulation + f32 identity/elementwise.
    out_bf16 = jax.block_until_ready(se_bottleneck(x, params))
    assert out_bf16.shape == (B, CEXP, L)
    err_bf16 = float(jnp.max(jnp.abs(out_bf16 - ref)))
    assert err_bf16 < 0.15, f"bf16 max err {err_bf16}"

    # f32 MXU path (exact semantics check).
    out_f32 = jax.block_until_ready(
        se_bottleneck(x, params, compute_dtype=jnp.float32))
    assert jnp.allclose(out_f32, ref, rtol=2e-3, atol=2e-3), \
        f"f32 max err {jnp.max(jnp.abs(out_f32 - ref))}"

    # Merged-batch path (B=4 -> batch_tile=2, N=256 lanes per grid step):
    # exercises the per-segment SE pooling and segment-boundary conv2 masks.
    x4 = jax.random.normal(jax.random.PRNGKey(7), (4, CIN, L), jnp.float32)
    ref4 = jax.block_until_ready(ref_forward(x4, params))
    out4 = jax.block_until_ready(
        se_bottleneck(x4, params, compute_dtype=jnp.float32))
    assert jnp.allclose(out4, ref4, rtol=2e-3, atol=2e-3), \
        f"merged-batch f32 max err {jnp.max(jnp.abs(out4 - ref4))}"

    print("KERNEL_OK")
</pallas_src>

<mosaic_0001>
module attributes {stable_mosaic.version = 11 : i64} {
  func.func @se_bottleneck_kernel(%arg0: i32, %arg1: memref<1x64x128xf32, #tpu.memory_space<vmem>>, %arg2: memref<32x64xbf16, #tpu.memory_space<vmem>>, %arg3: memref<32x1xf32, #tpu.memory_space<vmem>>, %arg4: memref<32x96xbf16, #tpu.memory_space<vmem>>, %arg5: memref<32x1xf32, #tpu.memory_space<vmem>>, %arg6: memref<64x32xbf16, #tpu.memory_space<vmem>>, %arg7: memref<64x1xf32, #tpu.memory_space<vmem>>, %arg8: memref<4x64xf32, #tpu.memory_space<vmem>>, %arg9: memref<64x4xf32, #tpu.memory_space<vmem>>, %arg10: memref<1x64x128xf32, #tpu.memory_space<vmem>>) attributes {dimension_semantics = [#tpu.dimension_semantics<parallel>], iteration_bounds = array<i64: 2>, scalar_prefetch = 0 : i64, scratch_operands = 0 : i64, tpu.core_type = #tpu.core_type<tc>, window_params = [{transform_indices = @transform_0, window_bounds = array<i64: 1, 64, 128>}, {pipeline_mode = #tpu.pipeline_mode<synchronous>, transform_indices = @transform_1, window_bounds = array<i64: 32, 64>}, {pipeline_mode = #tpu.pipeline_mode<synchronous>, transform_indices = @transform_2, window_bounds = array<i64: 32, 1>}, {pipeline_mode = #tpu.pipeline_mode<synchronous>, transform_indices = @transform_3, window_bounds = array<i64: 32, 96>}, {pipeline_mode = #tpu.pipeline_mode<synchronous>, transform_indices = @transform_4, window_bounds = array<i64: 32, 1>}, {pipeline_mode = #tpu.pipeline_mode<synchronous>, transform_indices = @transform_5, window_bounds = array<i64: 64, 32>}, {pipeline_mode = #tpu.pipeline_mode<synchronous>, transform_indices = @transform_6, window_bounds = array<i64: 64, 1>}, {pipeline_mode = #tpu.pipeline_mode<synchronous>, transform_indices = @transform_7, window_bounds = array<i64: 4, 64>}, {pipeline_mode = #tpu.pipeline_mode<synchronous>, transform_indices = @transform_8, window_bounds = array<i64: 64, 4>}, {transform_indices = @transform_9, window_bounds = array<i64: 1, 64, 128>}]} {
    %c0 = arith.constant 0 : index
    %c0_0 = arith.constant 0 : index
    %c0_1 = arith.constant 0 : index
    %0 = vector.load %arg1[%c0, %c0_0, %c0_1] : memref<1x64x128xf32, #tpu.memory_space<vmem>>, vector<1x64x128xf32>
    %1 = vector.shape_cast %0 : vector<1x64x128xf32> to vector<64x128xf32>
    %2 = arith.truncf %1 : vector<64x128xf32> to vector<64x128xbf16>
    %c0_2 = arith.constant 0 : index
    %c0_3 = arith.constant 0 : index
    %3 = vector.load %arg2[%c0_2, %c0_3] : memref<32x64xbf16, #tpu.memory_space<vmem>>, vector<32x64xbf16>
    %cst = arith.constant dense<0.000000e+00> : vector<32x128xf32>
    %4 = tpu.matmul %3, %2, %cst {dimension_numbers = #tpu.dot_dimension_numbers<[1], [0], [0], [1], [0, 0, 1, 1], [], []>} : vector<32x64xbf16>, vector<64x128xbf16>, vector<32x128xf32> -> vector<32x128xf32>
    %c0_4 = arith.constant 0 : index
    %c0_5 = arith.constant 0 : index
    %5 = vector.load %arg3[%c0_4, %c0_5] : memref<32x1xf32, #tpu.memory_space<vmem>>, vector<32x1xf32>
    %6 = vector.broadcast %5 : vector<32x1xf32> to vector<32x128xf32>
    %7 = arith.addf %4, %6 : vector<32x128xf32>
    %cst_6 = arith.constant 0.000000e+00 : f32
    %8 = vector.broadcast %cst_6 : f32 to vector<32x128xf32>
    %9 = arith.maximumf %7, %8 : vector<32x128xf32>
    %10 = tpu.iota {dimensions = array<i32: 1>} : vector<32x128xi32>
    %false = arith.constant false
    %11 = vector.broadcast %false : i1 to vector<32x128xi1>
    %false_7 = arith.constant false
    %12 = vector.broadcast %false_7 : i1 to vector<32x128xi1>
    %c0_i32 = arith.constant 0 : i32
    %13 = vector.broadcast %c0_i32 : i32 to vector<32x128xi32>
    %14 = arith.cmpi eq, %10, %13 : vector<32x128xi32>
    %15 = arith.ori %11, %14 : vector<32x128xi1>
    %c127_i32 = arith.constant 127 : i32
    %16 = vector.broadcast %c127_i32 : i32 to vector<32x128xi32>
    %17 = arith.cmpi eq, %10, %16 : vector<32x128xi32>
    %18 = arith.ori %12, %17 : vector<32x128xi1>
    %c1_i32 = arith.constant 1 : i32
    %19 = tpu.dynamic_rotate %9 by %c1_i32 dim 1 : vector<32x128xf32>, i32 -> vector<32x128xf32>
    %cst_8 = arith.constant 0.000000e+00 : f32
    %20 = vector.broadcast %cst_8 : f32 to vector<32x128xf32>
    %21 = arith.select %15, %20, %19 : vector<32x128xi1>, vector<32x128xf32>
    %c127_i32_9 = arith.constant 127 : i32
    %22 = tpu.dynamic_rotate %9 by %c127_i32_9 dim 1 : vector<32x128xf32>, i32 -> vector<32x128xf32>
    %cst_10 = arith.constant 0.000000e+00 : f32
    %23 = vector.broadcast %cst_10 : f32 to vector<32x128xf32>
    %24 = arith.select %18, %23, %22 : vector<32x128xi1>, vector<32x128xf32>
    %25 = arith.truncf %21 : vector<32x128xf32> to vector<32x128xbf16>
    %26 = arith.truncf %9 : vector<32x128xf32> to vector<32x128xbf16>
    %27 = arith.truncf %24 : vector<32x128xf32> to vector<32x128xbf16>
    %28 = tpu.concatenate %25, %26, %27 in 0 : vector<32x128xbf16>, vector<32x128xbf16>, vector<32x128xbf16> -> vector<96x128xbf16>
    %c0_11 = arith.constant 0 : index
    %c0_12 = arith.constant 0 : index
    %29 = vector.load %arg4[%c0_11, %c0_12] : memref<32x96xbf16, #tpu.memory_space<vmem>>, vector<32x96xbf16>
    %cst_13 = arith.constant dense<0.000000e+00> : vector<32x128xf32>
    %30 = tpu.matmul %29, %28, %cst_13 {dimension_numbers = #tpu.dot_dimension_numbers<[1], [0], [0], [1], [0, 0, 1, 1], [], []>} : vector<32x96xbf16>, vector<96x128xbf16>, vector<32x128xf32> -> vector<32x128xf32>
    %c0_14 = arith.constant 0 : index
    %c0_15 = arith.constant 0 : index
    %31 = vector.load %arg5[%c0_14, %c0_15] : memref<32x1xf32, #tpu.memory_space<vmem>>, vector<32x1xf32>
    %32 = vector.broadcast %31 : vector<32x1xf32> to vector<32x128xf32>
    %33 = arith.addf %30, %32 : vector<32x128xf32>
    %cst_16 = arith.constant 0.000000e+00 : f32
    %34 = vector.broadcast %cst_16 : f32 to vector<32x128xf32>
    %35 = arith.maximumf %33, %34 : vector<32x128xf32>
    %c0_17 = arith.constant 0 : index
    %c0_18 = arith.constant 0 : index
    %36 = vector.load %arg6[%c0_17, %c0_18] : memref<64x32xbf16, #tpu.memory_space<vmem>>, vector<64x32xbf16>
    %37 = arith.truncf %35 : vector<32x128xf32> to vector<32x128xbf16>
    %cst_19 = arith.constant dense<0.000000e+00> : vector<64x128xf32>
    %38 = tpu.matmul %36, %37, %cst_19 {dimension_numbers = #tpu.dot_dimension_numbers<[1], [0], [0], [1], [0, 0, 1, 1], [], []>} : vector<64x32xbf16>, vector<32x128xbf16>, vector<64x128xf32> -> vector<64x128xf32>
    %c0_20 = arith.constant 0 : index
    %c0_21 = arith.constant 0 : index
    %39 = vector.load %arg7[%c0_20, %c0_21] : memref<64x1xf32, #tpu.memory_space<vmem>>, vector<64x1xf32>
    %40 = vector.broadcast %39 : vector<64x1xf32> to vector<64x128xf32>
    %41 = arith.addf %38, %40 : vector<64x128xf32>
    %cst_22 = arith.constant dense<0.000000e+00> : vector<64xf32>
    %42 = vector.multi_reduction <add>, %41, %cst_22 [1] : vector<64x128xf32> to vector<64xf32>
    %43 = vector.shape_cast %42 : vector<64xf32> to vector<64x1xf32>
    %cst_23 = arith.constant 1.280000e+02 : f32
    %44 = vector.broadcast %cst_23 : f32 to vector<64x1xf32>
    %45 = arith.divf %43, %44 : vector<64x1xf32>
    %c0_24 = arith.constant 0 : index
    %c0_25 = arith.constant 0 : index
    %46 = vector.load %arg8[%c0_24, %c0_25] : memref<4x64xf32, #tpu.memory_space<vmem>>, vector<4x64xf32>
    %cst_26 = arith.constant dense<0.000000e+00> : vector<4x1xf32>
    %47 = tpu.matmul %46, %45, %cst_26 {dimension_numbers = #tpu.dot_dimension_numbers<[1], [0], [0], [1], [0, 0, 1, 1], [], []>} : vector<4x64xf32>, vector<64x1xf32>, vector<4x1xf32> -> vector<4x1xf32>
    %cst_27 = arith.constant 0.000000e+00 : f32
    %48 = vector.broadcast %cst_27 : f32 to vector<4x1xf32>
    %49 = arith.maximumf %47, %48 : vector<4x1xf32>
    %c0_28 = arith.constant 0 : index
    %c0_29 = arith.constant 0 : index
    %50 = vector.load %arg9[%c0_28, %c0_29] : memref<64x4xf32, #tpu.memory_space<vmem>>, vector<64x4xf32>
    %cst_30 = arith.constant dense<0.000000e+00> : vector<64x1xf32>
    %51 = tpu.matmul %50, %49, %cst_30 {dimension_numbers = #tpu.dot_dimension_numbers<[1], [0], [0], [1], [0, 0, 1, 1], [], []>} : vector<64x4xf32>, vector<4x1xf32>, vector<64x1xf32> -> vector<64x1xf32>
    %52 = arith.negf %51 : vector<64x1xf32>
    %53 = math.exp %52 : vector<64x1xf32>
    %cst_31 = arith.constant 1.000000e+00 : f32
    %54 = vector.broadcast %cst_31 : f32 to vector<64x1xf32>
    %55 = arith.addf %54, %53 : vector<64x1xf32>
    %56 = arith.divf %54, %55 : vector<64x1xf32>
    %57 = vector.broadcast %56 : vector<64x1xf32> to vector<64x128xf32>
    %58 = arith.mulf %41, %57 : vector<64x128xf32>
    %c0_32 = arith.constant 0 : index
    %c0_33 = arith.constant 0 : index
    %c0_34 = arith.constant 0 : index
    %59 = vector.load %arg1[%c0_32, %c0_33, %c0_34] : memref<1x64x128xf32, #tpu.memory_space<vmem>>, vector<1x64x128xf32>
    %60 = vector.shape_cast %59 : vector<1x64x128xf32> to vector<64x128xf32>
    %61 = arith.addf %58, %60 : vector<64x128xf32>
    %cst_35 = arith.constant 0.000000e+00 : f32
    %62 = vector.broadcast %cst_35 : f32 to vector<64x128xf32>
    %63 = arith.maximumf %61, %62 : vector<64x128xf32>
    %c0_36 = arith.constant 0 : index
    %c0_37 = arith.constant 0 : index
    %c0_38 = arith.constant 0 : index
    %64 = vector.load %arg10[%c0_36, %c0_37, %c0_38] : memref<1x64x128xf32, #tpu.memory_space<vmem>>, vector<1x64x128xf32>
    %65 = vector.shape_cast %64 : vector<1x64x128xf32> to vector<64x128xf32>
    %66 = vector.shape_cast %63 : vector<64x128xf32> to vector<1x64x128xf32>
    tpu.vector_store %arg10[%c0_36, %c0_37, %c0_38], %66 {strides = array<i32>} : memref<1x64x128xf32, #tpu.memory_space<vmem>>, vector<1x64x128xf32>,
    return
  }
  func.func @transform_0(%arg0: i32) -> (i32, i32, i32) {
    %c0_i32 = arith.constant 0 : i32
    %c0_i32_0 = arith.constant 0 : i32
    %c0_i32_1 = arith.constant 0 : i32
    return %arg0, %c0_i32, %c0_i32_0 : i32, i32, i32
  }
  func.func @transform_1(%arg0: i32) -> (i32, i32) {
    %c0_i32 = arith.constant 0 : i32
    %c0_i32_0 = arith.constant 0 : i32
    %c0_i32_1 = arith.constant 0 : i32
    return %c0_i32, %c0_i32_0 : i32, i32
  }
  func.func @transform_2(%arg0: i32) -> (i32, i32) {
    %c0_i32 = arith.constant 0 : i32
    %c0_i32_0 = arith.constant 0 : i32
    %c0_i32_1 = arith.constant 0 : i32
    return %c0_i32, %c0_i32_0 : i32, i32
  }
  func.func @transform_3(%arg0: i32) -> (i32, i32) {
    %c0_i32 = arith.constant 0 : i32
    %c0_i32_0 = arith.constant 0 : i32
    %c0_i32_1 = arith.constant 0 : i32
    return %c0_i32, %c0_i32_0 : i32, i32
  }
  func.func @transform_4(%arg0: i32) -> (i32, i32) {
    %c0_i32 = arith.constant 0 : i32
    %c0_i32_0 = arith.constant 0 : i32
    %c0_i32_1 = arith.constant 0 : i32
    return %c0_i32, %c0_i32_0 : i32, i32
  }
  func.func @transform_5(%arg0: i32) -> (i32, i32) {
    %c0_i32 = arith.constant 0 : i32
    %c0_i32_0 = arith.constant 0 : i32
    %c0_i32_1 = arith.constant 0 : i32
    return %c0_i32, %c0_i32_0 : i32, i32
  }
  func.func @transform_6(%arg0: i32) -> (i32, i32) {
    %c0_i32 = arith.constant 0 : i32
    %c0_i32_0 = arith.constant 0 : i32
    %c0_i32_1 = arith.constant 0 : i32
    return %c0_i32, %c0_i32_0 : i32, i32
  }
  func.func @transform_7(%arg0: i32) -> (i32, i32) {
    %c0_i32 = arith.constant 0 : i32
    %c0_i32_0 = arith.constant 0 : i32
    %c0_i32_1 = arith.constant 0 : i32
    return %c0_i32, %c0_i32_0 : i32, i32
  }
  func.func @transform_8(%arg0: i32) -> (i32, i32) {
    %c0_i32 = arith.constant 0 : i32
    %c0_i32_0 = arith.constant 0 : i32
    %c0_i32_1 = arith.constant 0 : i32
    return %c0_i32, %c0_i32_0 : i32, i32
  }
  func.func @transform_9(%arg0: i32) -> (i32, i32, i32) {
    %c0_i32 = arith.constant 0 : i32
    %c0_i32_0 = arith.constant 0 : i32
    %c0_i32_1 = arith.constant 0 : i32
    return %arg0, %c0_i32, %c0_i32_0 : i32, i32, i32
  }
}

</mosaic_0001>

<bundles_post_ra>
// kernel: tpu_custom_call.1
= control target key start
LH: loop header
LB: loop body
LE: loop exit
PB: predicated region body
PF: predicated region fallthrough
CT: control target
= control target key end

     0   :  { %14 = vsyncpa [#allocation3], 0  ;;  %s1895_s0 = inlined_call_operand.vmem [shape: f32[2,64,128], index: 0, kind: input, shape index: {}]   ;;  %s1896_s1 = inlined_call_operand.vmem [shape: bf16[32,64], index: 1, kind: input, shape index: {}]   ;;  %s1897_s2 = inlined_call_operand.vmem [shape: f32[32,1], index: 2, kind: input, shape index: {}]   ;;  %s1898_s3 = inlined_call_operand.vmem [shape: bf16[32,96], index: 3, kind: input, shape index: {}]   ;;  %s1899_s4 = inlined_call_operand.vmem [shape: f32[32,1], index: 4, kind: input, shape index: {}]   ;;  %s1900_s5 = inlined_call_operand.vmem [shape: bf16[64,32], index: 5, kind: input, shape index: {}]   ;;  %s1901_s6 = inlined_call_operand.vmem [shape: f32[64,1], index: 6, kind: input, shape index: {}]   ;;  %s1902_s7 = inlined_call_operand.vmem [shape: f32[4,64], index: 7, kind: input, shape index: {}]   ;;  %s1903_s8 = inlined_call_operand.vmem [shape: f32[64,4], index: 8, kind: input, shape index: {}]   ;;  %s1904_s9 = inlined_call_operand.hbm [shape: f32[2,64,128], index: 9, kind: output, shape index: {}]  }
   0x1   :  { %16 = vsyncpa [#allocation3 + $0x1], 0  ;;  %s1593_s30 = smov 0   ;;  %s1595_s10 = smov 0  }
   0x2   :  { %s1597_s11 = smov 0   ;;  %s1599_s12 = smov 0  }
   0x3 LB: > { %s1614_s13 = sadd.s32 4294967295, %s1532_s12   ;;  %s1168_s14 = sadd.s32 4294967294, %s1532_s12   ;;  %s1532_s12 = sphi %s1599_s12, %s1910_s12   ;;  %s1528_s11 = sphi %s1597_s11, %s1909_s11   ;;  %s1524_s10 = sphi %s1595_s10, %s1908_s10   ;;  %s1520_s30 = sphi %s1593_s30, %s1907_s30  }
   0x4   : > { %s1618_s15 = sadd.s32 1, %s1532_s12   ;;  %s223_s16 = sadd.s32 1, %s1528_s11 }
   0x5   : > { %s220_s17 = ssub.s32 %s1532_s12, %s1618_s15  ;;  %p233_p0 = scmp.ne.s32.totalorder %s1528_s11, %s1524_s10 }
   0x6   : > { %p221_p1 = scmp.eq.s32.totalorder %s220_s17, 0  ;;  %p234_p2 = scmp.eq.s32.totalorder %s1614_s13, 1 }
   0x7   : > { %p239_p3 = scmp.ne.s32.totalorder %s1524_s10, %s1520_s30  ;;  %p240_p4 = scmp.eq.s32.totalorder %s1168_s14, 1 }
   0x8   : > { %s1629_s18 = scalar_select %p221_p1, %s1528_s11, %s223_s16  }
   0x9   : > { %p1631_p5 = por %p234_p2, %p233_p0  ;;  %p1635_p6 = por %p240_p4, %p239_p3 }
   0xa   : > { %p1171_p7 = scmp.ge.s32.totalorder %s1532_s12, 1  ;;  %p290_p8 = scmp.lt.s32.totalorder %s1532_s12, 3 }
   0xc   : > { %p291_p9 = pnand %p1171_p7, %p290_p8 }
   0xd   : > { %p326_p10 = scmp.lt.s32.totalorder (!%p291_p9), %s1614_s13, 1  ;;  %v1430_v0 = vld [vmem:[%s1896_s1] sm:$0xff] (!%p291_p9)   ;;  %vm382_vm0 = vcmask (!%p291_p9), 523264   ;;  %v350_v2 = vld [vmem:[%s1897_s2 + $0x10] sm:$0xff] (!%p291_p9)  ;;  %v1534_v3 = vmov (!%p291_p9), 0   ;;  %v349_v4 = vld [vmem:[%s1897_s2 + $0x8] sm:$0xff] (!%p291_p9)  ;;  %v442_v52 = vlaneseq (!%p291_p9) }
   0xe   : > { %294 = sbr.rel (%p291_p9) target bundleno = 1637 (0x665), region = 56  ;;  %1284 = vmatprep.mubr.msk.bf16.mxu0 (!%p291_p9), %vm382_vm0, %v1430_v0  ;;  %v348_v1 = vld [vmem:[%s1897_s2] sm:$0xff] (!%p291_p9)  ;;  %1408 = vset.pattern.permute.xlu0 (!%p291_p9), %v1534_v3  ;;  %v351_v5 = vld [vmem:[%s1897_s2 + $0x18] sm:$0xff] (!%p291_p9)  ;;  %v1431_v18 = vld [vmem:[%s1896_s1 + $0x8] sm:$0xff] (!%p291_p9)   ;;  %s1535_s26 = smov (!%p291_p9), 1   ;;  %vm514_vm1 = vcmask (!%p291_p9), 785408  }
   0xf   : > { %1409 = vset.pattern.permute.xlu1 (!%p291_p9), %v1534_v3  ;;  %354 = vperm.xlu0 (!%p291_p9), %1408, %v348_v1   ;;  %s1536_s27 = smov (!%p291_p9), 127   ;;  %v481_v39 = vld [vmem:[%s1899_s4 + $0x8] sm:$0xff] (!%p291_p9)  ;;  %v480_v40 = vld [vmem:[%s1899_s4] sm:$0xff] (!%p291_p9)  ;;  %v483_v41 = vld [vmem:[%s1899_s4 + $0x18] sm:$0xff] (!%p291_p9)  ;;  %v443_v53 = vand.u32 (!%p291_p9), 127, %v442_v52  ;;  %vm652_vm6 = vcmask (!%p291_p9), 261120  }
  0x10   : > { %364 = vperm.xlu1 (!%p291_p9), %1409, %v350_v2   ;;  %v482_v42 = vld [vmem:[%s1899_s4 + $0x10] sm:$0xff] (!%p291_p9)  ;;  %v585_v43 = vld [vmem:[%s1901_s6 + $0x8] sm:$0xff] (!%p291_p9)  ;;  %v1432_v44 = vld [vmem:[%s1898_s3] sm:$0xff] (!%p291_p9)   ;;  %vm1538_vm7 = vmmov (!%p291_p9), 0   ;;  %vm838_vm8 = vcmask (!%p291_p9), 31744   ;;  %vm863_vm9 = vcmask (!%p291_p9), 1043456  }
  0x11   : > { %v584_v45 = vld [vmem:[%s1901_s6] sm:$0xff] (!%p291_p9)  ;;  %1300 = vmatprep.mubr.msk.bf16.mxu1 (!%p291_p9), %vm514_vm1, %v1432_v44  ;;  %v587_v46 = vld [vmem:[%s1901_s6 + $0x18] sm:$0xff] (!%p291_p9)  ;;  %v586_v47 = vld [vmem:[%s1901_s6 + $0x10] sm:$0xff] (!%p291_p9)  ;;  %vm1236_vm2 = vcmp.ne.s32.totalorder (!%p291_p9), %v443_v53, 0  ;;  %vm1237_vm4 = vcmp.ne.s32.totalorder (!%p291_p9), %v443_v53, 127  ;;  %s323_s22 = sand.u32 (!%p291_p9), 1, %s1524_s10  }
  0x12   : > { %v589_v48 = vld [vmem:[%s1901_s6 + $0x28] sm:$0xff] (!%p291_p9)  ;;  %v588_v49 = vld [vmem:[%s1901_s6 + $0x20] sm:$0xff] (!%p291_p9)  ;;  %v591_v50 = vld [vmem:[%s1901_s6 + $0x38] sm:$0xff] (!%p291_p9)  ;;  %s1235_s25 = sshll.u32 (!%p291_p9), %s1614_s13, 10  ;;  %s1540_s16 = smov (!%p291_p9), [#allocation2]  }
  0x13   : > { %359 = vperm.xlu0 (!%p291_p9), %1408, %v349_v4   ;;  %v590_v51 = vld [vmem:[%s1901_s6 + $0x30] sm:$0xff] (!%p291_p9)  ;;  %vm1183_vm3 = vmpackc.low (!%p291_p9), %vm1236_vm2, %vm1236_vm2  ;;  %s1846_s29 = scalar_lea.hbm (!%p291_p9), %s1904_s9, %s1235_s25  ;;  %s1474_s17 = sshll.u32 (!%p291_p9), %s1540_s16, 4  ;;  %s1475_s17 = int_to_ptr.vmem [resolvable:$false] %s1474_s17 }
  0x14   : > { %369 = vperm.xlu1 (!%p291_p9), %1409, %v351_v5   ;;  %vm1193_vm5 = vmpackc.low (!%p291_p9), %vm1237_vm4, %vm1237_vm4  ;;  %s1476_s21 = scalar_lea.vmem (!%p291_p9), %s1475_s17, 2048 }
  0x15   : > { %s327_s23 = scalar_select %p326_p10, %s1614_s13, 1 }
  0x16   : > { %s1854_s13 = scalar_lea.sflag [#allocation3], %s323_s22 }
  0x17   : > { %s1234_s14 = sshll.u32 %s327_s23, 6 }
  0x18   : > { %s330_s24 = scalar_lea.vmem %s1895_s0, %s1234_s14 }
  0x19   : > { %v1662_v6 = vld [vmem:[%s330_s24] sm:$0xff]  ;;  %v1664_v7 = vld [vmem:[%s330_s24 + $0x8] sm:$0xff]  ;;  %v1666_v8 = vld [vmem:[%s330_s24 + $0x10] sm:$0xff] }
  0x1a   : > { %v340_v9 = vpack.c.bf16 %v1664_v7, %v1662_v6  ;;  %v1670_v10 = vld [vmem:[%s330_s24 + $0x18] sm:$0xff]  ;;  %v1674_v12 = vld [vmem:[%s330_s24 + $0x20] sm:$0xff]  ;;  %v1676_v13 = vld [vmem:[%s330_s24 + $0x28] sm:$0xff] }
  0x1b   : > { %v341_v11 = vpack.c.bf16 %v1670_v10, %v1666_v8  ;;  %v342_v14 = vpack.c.bf16 %v1676_v13, %v1674_v12  ;;  %v1680_v15 = vld [vmem:[%s330_s24 + $0x30] sm:$0xff]  ;;  %v1682_v16 = vld [vmem:[%s330_s24 + $0x38] sm:$0xff]  ;;  %s1172_s24 = sshll.u32 %s323_s22, 6 }
  0x1c   : > { %1276 = vmatprep.subr.bf16.mxu0 %v340_v9  ;;  %v343_v17 = vpack.c.bf16 %v1682_v16, %v1680_v15  ;;  %s1822_s23 = scalar_lea.vmem [#allocation2], %s1172_s24 }
  0x1d   : > { %1277 = vmatpush3.bf16.msra.mxu0 %v340_v9  ;;  %v1433_v9 = vld [vmem:[%s1898_s3 + $0x8] sm:$0xff]  }
  0x1e   : > { %1278 = vmatprep.subr.bf16.mxu0 %v341_v11 }
  0x21   : > { %1279 = vmatpush3.bf16.msra.mxu0 %v341_v11  ;;  %v1434_v11 = vld [vmem:[%s1900_s5] sm:$0xff]  }
  0x22   : > { %1280 = vmatprep.subr.bf16.mxu0 %v342_v14 }
  0x25   : > { %1281 = vmatpush3.bf16.msra.mxu0 %v342_v14 }
  0x26   : > { %1282 = vmatprep.subr.bf16.mxu0 %v343_v17 }
  0x29   : > { %1283 = vmatpush3.bf16.msra.mxu0 %v343_v17 }
  0x2c   : > { %1285 = vmatmul.mubr.msk.bf16.vlgmr.msra.gmra.mrb[0].mxu0 %vm382_vm0, %v1431_v18 }
  0x2d   : > { %1308 = vmatprep.mubr.msk.bf16.mxu0 %vm652_vm6, %v1434_v11 }
  0x8e   : > { %v355_v20 = vpop.permute.xlu0 %354 }
  0x8f   : > { %v365_v19 = vpop.permute.xlu1 %364 }
  0x92   : > { %v360_v27 = vpop.permute.xlu0 %359 }
  0x93   : > { %v370_v22 = vpop.permute.xlu1 %369 }
  0xff   : > { %v1286_v21 = vpop.f32.mrb[0].mxu0 }
 0x100   : > { %v432_v23 = vadd.f32 %v1286_v21, %v365_v19  ;;  %v423_v24 = vpop.f32.mrb[1].mxu0 }
 0x101   : > { %v424_v25 = vadd.f32 %v423_v24, %v355_v20  ;;  %v1287_v26 = vpop.f32.mrb[2].mxu0 }
 0x102   : > { %v435_v28 = vadd.f32 %v1287_v26, %v370_v22  ;;  %v426_v29 = vpop.f32.mrb[3].mxu0  ;;  %v440_v31 = vmax.f32 %v432_v23, 0.0 }
 0x103   : > { %v427_v30 = vadd.f32 %v426_v29, %v360_v27  ;;  %v438_v33 = vmax.f32 %v424_v25, 0.0 }
 0x104   : > { %v441_v32 = vmax.f32 %v435_v28, 0.0 }
 0x105   : > { %v439_v34 = vmax.f32 %v427_v30, 0.0 }
 0x106   : > { %v1415_v35 = vpack.i.bf16 %v441_v32, %v440_v31  ;;  %v1690_v36 = vpack.c.bf16 %v441_v32, %v440_v31 }
 0x107   : > { %v1410_v37 = vpack.i.bf16 %v439_v34, %v438_v33  ;;  %v472_v38 = vpack.c.bf16 %v439_v34, %v438_v33  ;;  %v1435_v34 = vld [vmem:[%s1900_s5 + $0x8] sm:$0xff]  }
 0x108   : > { %1416 = vrot.lane.b32.xlu1 %v1415_v35, %s1535_s26 }
 0x109   : > { %1411 = vrot.lane.b32.xlu0 %v1410_v37, %s1535_s26  ;;  %s1106_s26 = sshll.u32 %s1822_s23, 4  ;;  %s1848_s26 = int_to_ptr.vmem [resolvable:$true] %s1106_s26 }
 0x10a   : > { %s1470_s14 = scalar_lea.vmem %s1848_s26, 1024  ;;  %p1477_p0 = scmp.lt.s32.totalorder %s1848_s26, %s1475_s17 }
 0x10b   : > { %p1471_p11 = scmp.ne.s32.totalorder %s1848_s26, %s1470_s14  ;;  %p1478_p1 = scmp.lt.s32.totalorder %s1476_s21, %s1470_s14 }
 0x10c   : > { %1426 = vrot.lane.b32.xlu1 %v1415_v35, %s1536_s27  ;;  %v1436_v35 = vld [vmem:[%s1900_s5 + $0x10] sm:$0xff]  }
 0x10d   : > { %1421 = vrot.lane.b32.xlu0 %v1410_v37, %s1536_s27  ;;  %p1472_p12 = pnand %p1471_p11, %p1631_p5  ;;  %p1479_p2 = por %p1478_p1, %p1477_p0 }
 0x10f   : > { %p1473_p13 = pneg %p1472_p12 }
 0x110   : > { %491 = vperm.xlu1 %1409, %v481_v39  }
 0x111   : > { %486 = vperm.xlu0 %1408, %v480_v40   ;;  %p1480_p3 = pnand %p1479_p2, %p1473_p13 }
 0x114   : > { %501 = vperm.xlu1 %1409, %v483_v41  }
 0x115   : > { %496 = vperm.xlu0 %1408, %v482_v42  }
 0x118   : > { %599 = vperm.xlu1 %1409, %v585_v43  }
 0x119   : > { %594 = vperm.xlu0 %1408, %v584_v45  }
 0x11c   : > { %609 = vperm.xlu1 %1409, %v587_v46  }
 0x11d   : > { %604 = vperm.xlu0 %1408, %v586_v47  }
 0x120   : > { %619 = vperm.xlu1 %1409, %v589_v48  }
 0x121   : > { %614 = vperm.xlu0 %1408, %v588_v49  }
 0x124   : > { %629 = vperm.xlu1 %1409, %v591_v50  }
 0x125   : > { %624 = vperm.xlu0 %1408, %v590_v51  }
 0x17a   : > { %v1417_v54 = vpop.permute.xlu1 %1416 }
 0x17b   : > { %v1412_v55 = vpop.permute.xlu0 %1411  ;;  %v1419_v56 = vunpack.i.h.bf16 %v1417_v54  ;;  %v1418_v57 = vunpack.i.l.bf16 %v1417_v54 }
 0x17c   : > { %v1414_v58 = vunpack.i.h.bf16 %v1412_v55  ;;  %v1413_v59 = vunpack.i.l.bf16 %v1412_v55 }
 0x17d   : > { %v1189_v61 = vpack.c.bf16 %v1419_v56, %v1418_v57 }
 0x17e   : > { %v1184_v60 = vpack.c.bf16 %v1414_v58, %v1413_v59  ;;  %v1427_v1 = vpop.permute.xlu1 %1426 }
 0x17f   : > { %v1422_v62 = vpop.permute.xlu0 %1421  ;;  %v1429_v2 = vunpack.i.h.bf16 %v1427_v1  ;;  %v1428_v3 = vunpack.i.l.bf16 %v1427_v1 }
 0x180   : > { %1288 = vmatprep.subr.msk.bf16.mxu1 %vm1183_vm3, %v1184_v60  ;;  %v1424_v63 = vunpack.i.h.bf16 %v1422_v62  ;;  %v1423_v0 = vunpack.i.l.bf16 %v1422_v62  ;;  %v1539_v62 = vmov 0.0  }
 0x181   : > { %1289 = vmatpush3.bf16.msk.msra.mxu1 %vm1183_vm3, %v1184_v60  ;;  %v1199_v5 = vpack.c.bf16 %v1429_v2, %v1428_v3 }
 0x182   : > { %1290 = vmatprep.subr.msk.bf16.mxu1 %vm1183_vm3, %v1189_v61  ;;  %v1194_v4 = vpack.c.bf16 %v1424_v63, %v1423_v0 }
 0x185   : > { %1291 = vmatpush3.bf16.msk.msra.mxu1 %vm1183_vm3, %v1189_v61  ;;  %v1537_v61 = vmov 0.0|0.0  }
 0x186   : > { %1292 = vmatprep.subr.bf16.mxu1 %v472_v38 }
 0x189   : > { %1293 = vmatpush3.bf16.msra.mxu1 %v472_v38 }
 0x18a   : > { %1294 = vmatprep.subr.bf16.mxu1 %v1690_v36 }
 0x18d   : > { %1295 = vmatpush3.bf16.msra.mxu1 %v1690_v36  ;;  %v1437_v36 = vld [vmem:[%s1900_s5 + $0x18] sm:$0xff]  }
 0x18e   : > { %1296 = vmatprep.subr.msk.bf16.mxu1 %vm1193_vm5, %v1194_v4 }
 0x18f   : > { %v492_v17 = vpop.permute.xlu1 %491 }
 0x190   : > { %v487_v14 = vpop.permute.xlu0 %486 }
 0x191   : > { %1297 = vmatpush3.bf16.msk.msra.mxu1 %vm1193_vm5, %v1194_v4 }
 0x192   : > { %1298 = vmatprep.subr.msk.bf16.mxu1 %vm1193_vm5, %v1199_v5 }
 0x193   : > { %v502_v22 = vpop.permute.xlu1 %501 }
 0x194   : > { %v497_v18 = vpop.permute.xlu0 %496 }
 0x195   : > { %1299 = vmatpush3.bf16.msk.msra.mxu1 %vm1193_vm5, %v1199_v5 }
 0x197   : > { %v600_v38 = vpop.permute.xlu1 %599 }
 0x198   : > { %1301 = vmatmul.mubr.msk.bf16.vlgmr.msra.gmra.mrb[0].mxu1 %vm514_vm1, %v1433_v9  ;;  %v595_v37 = vpop.permute.xlu0 %594 }
 0x19b   : > { %v610_v46 = vpop.permute.xlu1 %609 }
 0x19c   : > { %v605_v40 = vpop.permute.xlu0 %604 }
 0x19f   : > { %v620_v54 = vpop.permute.xlu1 %619 }
 0x1a0   : > { %v615_v48 = vpop.permute.xlu0 %614 }
 0x1a3   : > { %v630_v59 = vpop.permute.xlu1 %629 }
 0x1a4   : > { %v625_v56 = vpop.permute.xlu0 %624 }
 0x26b   : > { %v1302_v19 = vpop.f32.mrb[0].mxu1 }
 0x26c   : > { %v564_v20 = vadd.f32 %v1302_v19, %v497_v18  ;;  %v555_v21 = vpop.f32.mrb[1].mxu1 }
 0x26d   : > { %v556_v23 = vadd.f32 %v555_v21, %v487_v14  ;;  %v1303_v24 = vpop.f32.mrb[2].mxu1 }
 0x26e   : > { %v567_v25 = vadd.f32 %v1303_v24, %v502_v22  ;;  %v558_v26 = vpop.f32.mrb[3].mxu1  ;;  %v572_v28 = vmax.f32 %v564_v20, 0.0 }
 0x26f   : > { %v559_v27 = vadd.f32 %v558_v26, %v492_v17  ;;  %v570_v30 = vmax.f32 %v556_v23, 0.0 }
 0x270   : > { %v573_v29 = vmax.f32 %v567_v25, 0.0 }
 0x271   : > { %v571_v31 = vmax.f32 %v559_v27, 0.0  ;;  %v755_v27 = vld [vmem:[%s1902_s7] sm:$0xf] }
 0x272   : > { %v583_v32 = vpack.c.bf16 %v573_v29, %v572_v28  ;;  %v830_v28 = vld [vmem:[%s1903_s8] sm:$0xff] }
 0x273   : > { %v582_v33 = vpack.c.bf16 %v571_v31, %v570_v30  ;;  %1337 = vmatprep.mubr.msk.f32.mxu1 %vm838_vm8, %v830_v28 }
 0x275   : > { %1304 = vmatprep.subr.bf16.mxu0 %v582_v33 }
 0x276   : > { %1305 = vmatpush3.bf16.msra.mxu0 %v582_v33  ;;  %v832_v33 = vld [vmem:[%s1903_s8 + $0x10] sm:$0xff] }
 0x277   : > { %1306 = vmatprep.subr.bf16.mxu0 %v583_v32 }
 0x27a   : > { %1307 = vmatpush3.bf16.msra.mxu0 %v583_v32  ;;  %v831_v32 = vld [vmem:[%s1903_s8 + $0x8] sm:$0xff] }
 0x27b   : > { %1349 = vmatprep.subr.bf16.mxu0 %v1537_v61 }
 0x27d   : > { %1309 = vmatmul.mubr.msk.bf16.vlgmr.msra.gmra.mrb[4].mxu0 %vm652_vm6, %v1435_v34  ;;  %v833_v34 = vld [vmem:[%s1903_s8 + $0x18] sm:$0xff] }
 0x27e   : > { %1312 = vmatprep.mubr.msk.bf16.mxu0 %vm652_vm6, %v1436_v35  ;;  %v834_v35 = vld [vmem:[%s1903_s8 + $0x20] sm:$0xff] }
 0x285   : > { %1313 = vmatmul.mubr.msk.bf16.gmra.mrb[8].mxu0 %vm652_vm6, %v1437_v36  ;;  %v835_v36 = vld [vmem:[%s1903_s8 + $0x28] sm:$0xff] }
 0x286   : > { %1332 = vmatprep.mubr.msk.f32.mxu0 %vm1538_vm7, %v1539_v62 }
 0x350   : > { %v1310_v39 = vpop.f32.mrb[4].mxu0 }
 0x351   : > { %v699_v41 = vpop.f32.mrb[5].mxu0  ;;  %v1759_v47 = vadd.f32 %v1310_v39, %v605_v40 }
 0x352   : > { %v1754_v42 = vadd.f32 %v699_v41, %v595_v37  ;;  %v1311_v43 = vpop.f32.mrb[6].mxu0  ;;  %v836_v37 = vld [vmem:[%s1903_s8 + $0x30] sm:$0xff] }
 0x353   : > { %v702_v44 = vpop.f32.mrb[7].mxu0  ;;  %v1763_v51 = vadd.f32 %v1311_v43, %v610_v46 }
 0x354   : > { %v1756_v45 = vadd.f32 %v702_v44, %v600_v38  ;;  %730 = vadd.xlane.f32.xlu0 %v1754_v42  ;;  %v837_v38 = vld [vmem:[%s1903_s8 + $0x38] sm:$0xff] }
 0x356   : > { %732 = vadd.xlane.f32.xlu1 %v1756_v45 }
 0x358   : > { %v1314_v49 = vpop.f32.mrb[8].mxu0  ;;  %734 = vadd.xlane.f32.xlu0 %v1759_v47 }
 0x359   : > { %v715_v50 = vpop.f32.mrb[9].mxu0  ;;  %v1769_v57 = vadd.f32 %v1314_v49, %v625_v56 }
 0x35a   : > { %v1765_v52 = vadd.f32 %v715_v50, %v615_v48  ;;  %v1315_v53 = vpop.f32.mrb[10].mxu0 }
 0x35b   : > { %v718_v55 = vpop.f32.mrb[11].mxu0  ;;  %v1775_v60 = vadd.f32 %v1315_v53, %v630_v59 }
 0x35c   : > { %738 = vadd.xlane.f32.xlu1 %v1765_v52  ;;  %736 = vadd.xlane.f32.xlu0 %v1763_v51  ;;  %v1771_v58 = vadd.f32 %v718_v55, %v620_v54 }
 0x360   : > { %742 = vadd.xlane.f32.xlu1 %v1769_v57  ;;  %740 = vadd.xlane.f32.xlu0 %v1771_v58 }
 0x364   : > { %744 = vadd.xlane.f32.xlu0 %v1775_v60 }
 0x3e1   : > { %v731_v63 = vpop.xlane.xlu0 %730 }
 0x3e2   : > { %v747_v1 = vmul.f32 0.0078125, %v731_v63 }
 0x3e3   : > { %v733_v0 = vpop.xlane.xlu1 %732 }
 0x3e4   : > { %v748_v2 = vmul.f32 0.0078125, %v733_v0 }
 0x3e5   : > { %v735_v3 = vpop.xlane.xlu0 %734 }
 0x3e6   : > { %v1350_v4 = vpack.c.bf16 %v748_v2, %v747_v1  ;;  %v749_v11 = vmul.f32 0.0078125, %v735_v3 }
 0x3e8   : > { %1351 = vmatpush3.bf16.msra.mxu0 %v1350_v4 }
 0x3e9   : > { %v739_v5 = vpop.xlane.xlu1 %738  ;;  %v737_v9 = vpop.xlane.xlu0 %736  ;;  %1352 = vmatprep.subr.bf16.mxu0 %v1537_v61 }
 0x3ea   : > { %v750_v14 = vmul.f32 0.0078125, %v737_v9  ;;  %v751_v19 = vmul.f32 0.0078125, %v739_v5 }
 0x3ec   : > { %v1353_v17 = vpack.c.bf16 %v750_v14, %v749_v11 }
 0x3ed   : > { %v741_v18 = vpop.xlane.xlu0 %740  ;;  %v743_v21 = vpop.xlane.xlu1 %742 }
 0x3ee   : > { %v752_v20 = vmul.f32 0.0078125, %v741_v18  ;;  %1354 = vmatpush3.bf16.msra.mxu0 %v1353_v17  ;;  %v753_v24 = vmul.f32 0.0078125, %v743_v21 }
 0x3ef   : > { %1355 = vmatprep.subr.bf16.mxu0 %v1537_v61 }
 0x3f0   : > { %v1356_v22 = vpack.c.bf16 %v752_v20, %v751_v19 }
 0x3f1   : > { %v745_v23 = vpop.xlane.xlu0 %744 }
 0x3f2   : > { %v754_v25 = vmul.f32 0.0078125, %v745_v23  ;;  %1357 = vmatpush3.bf16.msra.mxu0 %v1356_v22 }
 0x3f3   : > { %1358 = vmatprep.subr.bf16.mxu0 %v1537_v61 }
 0x3f4   : > { %v1359_v26 = vpack.c.bf16 %v754_v25, %v753_v24 }
 0x3f6   : > { %1360 = vmatpush3.bf16.msra.mxu0 %v1359_v26 }
 0x3f9   : > { %1333 = vmatmul.mubr.msk.f32.vlgmr.msra.gmra.mrb[12].mxu0 %vm382_vm0, %v755_v27 }
 0x4cc   : > { %v825_v29 = vpop.f32.mrb[12].mxu0 }
 0x4cd   : > { %v829_v30 = vmax.f32 %v825_v29, 0.0  ;;  %v1334_v31 = vpop.f32.mrb[13].mxu0 }
 0x4cf   : > { %1335 = vmatprep.subr.msk.mxu1 %vm863_vm9, %v829_v30 }
 0x4d0   : > { %1336 = vmatpush3.msk.msra.mxu1 %vm863_vm9, %v829_v30 }
 0x4d1   : > { %1338 = vmatmul.mubr.msk.f32.vlgmr.msra.gmra.mrb[4].mxu1 %vm838_vm8, %v831_v32 }
 0x4d2   : > { %1340 = vmatprep.mubr.msk.f32.mxu1 %vm838_vm8, %v832_v33 }
 0x4d5   : > { %1341 = vmatmul.mubr.msk.f32.gmra.mrb[6].mxu1 %vm838_vm8, %v833_v34 }
 0x4d6   : > { %1343 = vmatprep.mubr.msk.f32.mxu1 %vm838_vm8, %v834_v35 }
 0x4d9   : > { %1344 = vmatmul.mubr.msk.f32.gmra.mrb[8].mxu1 %vm838_vm8, %v835_v36 }
 0x4da   : > { %1346 = vmatprep.mubr.msk.f32.mxu1 %vm838_vm8, %v836_v37 }
 0x4dd   : > { %1347 = vmatmul.mubr.msk.f32.gmra.mrb[10].mxu1 %vm838_vm8, %v837_v38 }
 0x5a4   : > { %v1339_v39 = vpop.f32.mrb[4].mxu1 }
 0x5a5   : > { %v1222_v40 = vmul.f32 -1.442695, %v1339_v39  ;;  %v933_v41 = vpop.f32.mrb[5].mxu1 }
 0x5a6   : > { %v1221_v43 = vmul.f32 -1.442695, %v933_v41 }
 0x5a7   : > { %1438 = vpow2.f32 %v1222_v40 }
 0x5a8   : > { %1440 = vpow2.f32 %v1221_v43  ;;  %v1342_v44 = vpop.f32.mrb[6].mxu1 }
 0x5a9   : > { %v1224_v46 = vmul.f32 -1.442695, %v1342_v44  ;;  %v943_v48 = vpop.f32.mrb[7].mxu1 }
 0x5aa   : > { %v1223_v49 = vmul.f32 -1.442695, %v943_v48 }
 0x5ab   : > { %1442 = vpow2.f32 %v1224_v46 }
 0x5ac   : > { %1444 = vpow2.f32 %v1223_v49  ;;  %v1345_v50 = vpop.f32.mrb[8].mxu1 }
 0x5ad   : > { %v1226_v53 = vmul.f32 -1.442695, %v1345_v50  ;;  %v953_v54 = vpop.f32.mrb[9].mxu1 }
 0x5ae   : > { %v1225_v55 = vmul.f32 -1.442695, %v953_v54 }
 0x5af   : > { %1446 = vpow2.f32 %v1226_v53 }
 0x5b0   : > { %1448 = vpow2.f32 %v1225_v55  ;;  %v1348_v56 = vpop.f32.mrb[10].mxu1 }
 0x5b1   : > { %v1439_v59 = vpop.eup %1438  ;;  %v1228_v61 = vmul.f32 -1.442695, %v1348_v56  ;;  %v963_v62 = vpop.f32.mrb[11].mxu1 }
 0x5b2   : > { %v1441_v63 = vpop.eup %1440  ;;  %v997_v0 = vadd.f32 1.0, %v1439_v59  ;;  %v1227_v1 = vmul.f32 -1.442695, %v963_v62 }
 0x5b3   : > { %v996_v2 = vadd.f32 1.0, %v1441_v63  ;;  %1450 = vpow2.f32 %v1228_v61 }
 0x5b4   : > { %1452 = vrcp.f32 %v997_v0 }
 0x5b5   : > { %v1443_v3 = vpop.eup %1442  ;;  %1454 = vrcp.f32 %v996_v2 }
 0x5b6   : > { %v1445_v4 = vpop.eup %1444  ;;  %v999_v5 = vadd.f32 1.0, %v1443_v3  ;;  %1456 = vpow2.f32 %v1227_v1 }
 0x5b7   : > { %v998_v9 = vadd.f32 1.0, %v1445_v4 }
 0x5b8   : > { %1458 = vrcp.f32 %v999_v5 }
 0x5b9   : > { %v1447_v11 = vpop.eup %1446  ;;  %1460 = vrcp.f32 %v998_v9 }
 0x5ba   : > { %v1449_v14 = vpop.eup %1448  ;;  %v1001_v17 = vadd.f32 1.0, %v1447_v11 }
 0x5bb   : > { %v1000_v18 = vadd.f32 1.0, %v1449_v14 }
 0x5bd   : > { %v1451_v19 = vpop.eup %1450  ;;  %1462 = vrcp.f32 %v1000_v18 }
 0x5be   : > { %v1453_v20 = vpop.eup %1452  ;;  %v1003_v21 = vadd.f32 1.0, %v1451_v19  ;;  %1464 = vrcp.f32 %v1001_v17 }
 0x5bf   : > { %v1455_v22 = vpop.eup %1454  ;;  %1027 = vperm.xlu0 %1408, %v1453_v20  }
 0x5c0   : > { %v1457_v23 = vpop.eup %1456  ;;  %1022 = vperm.xlu1 %1409, %v1455_v22   ;;  %1466 = vrcp.f32 %v1003_v21 }
 0x5c1   : > { %v1002_v24 = vadd.f32 1.0, %v1457_v23 }
 0x5c2   : > { %v1459_v25 = vpop.eup %1458 }
 0x5c3   : > { %1468 = vrcp.f32 %v1002_v24  ;;  %v1461_v26 = vpop.eup %1460 }
 0x5c4   : > { %1037 = vperm.xlu1 %1409, %v1459_v25  }
 0x5c7   : > { %v1463_v27 = vpop.eup %1462 }
 0x5c8   : > { %1032 = vperm.xlu1 %1409, %v1461_v26   ;;  %1042 = vperm.xlu0 %1408, %v1463_v27   ;;  %v1465_v28 = vpop.eup %1464 }
 0x5ca   : > { %v1467_v29 = vpop.eup %1466 }
 0x5cc   : > { %1047 = vperm.xlu1 %1409, %v1465_v28  }
 0x5cd   : > { %v1469_v30 = vpop.eup %1468 }
 0x5ce   : > { %1052 = vperm.xlu0 %1408, %v1469_v30  }
 0x5d0   : > { %1057 = vperm.xlu1 %1409, %v1467_v29  }
 0x63e   : > { %v1028_v31 = vpop.permute.xlu0 %1027 }
 0x63f   : > { %v1061_v32 = vmul.f32 %v1028_v31, %v1756_v45  ;;  %v1023_v33 = vpop.permute.xlu1 %1022 }
 0x640   : > { %v1060_v34 = vmul.f32 %v1023_v33, %v1754_v42 }
 0x641   : > { %v1069_v35 = vadd.f32 %v1061_v32, %v1664_v7 }
 0x642   : > { %v1068_v36 = vadd.f32 %v1060_v34, %v1662_v6 }
 0x643   : > { %v1077_v37 = vmax.f32 %v1069_v35, 0.0  ;;  %v1038_v38 = vpop.permute.xlu1 %1037 }
 0x644   : > { %v1076_v39 = vmax.f32 %v1068_v36, 0.0  ;;  %v1063_v40 = vmul.f32 %v1038_v38, %v1763_v51 }
 0x645   : > { %1085 = vst [vmem:[%s1822_s23 + $0x8] sm:$0xff] %v1077_v37 }
 0x646   : > { %1084 = vst [vmem:[%s1822_s23] sm:$0xff] %v1076_v39  ;;  %v1071_v42 = vadd.f32 %v1063_v40, %v1670_v10 }
 0x647   : > { %v1033_v45 = vpop.permute.xlu1 %1032  ;;  %v1043_v7 = vpop.permute.xlu0 %1042 }
 0x648   : > { %v1079_v41 = vmax.f32 %v1071_v42, 0.0  ;;  %v1062_v6 = vmul.f32 %v1033_v45, %v1759_v47  ;;  %v1064_v43 = vmul.f32 %v1043_v7, %v1765_v52 }
 0x64a   : > { %1087 = vst [vmem:[%s1822_s23 + $0x18] sm:$0xff] %v1079_v41  ;;  %v1070_v51 = vadd.f32 %v1062_v6, %v1666_v8  ;;  %v1072_v44 = vadd.f32 %v1064_v43, %v1674_v12 }
 0x64b   : > { %v1048_v46 = vpop.permute.xlu1 %1047 }
 0x64c   : > { %v1078_v48 = vmax.f32 %v1070_v51, 0.0  ;;  %v1080_v49 = vmax.f32 %v1072_v44, 0.0  ;;  %v1065_v10 = vmul.f32 %v1048_v46, %v1771_v58 }
 0x64d   : > { %v1053_v50 = vpop.permute.xlu0 %1052 }
 0x64e   : > { %1086 = vst [vmem:[%s1822_s23 + $0x10] sm:$0xff] %v1078_v48  ;;  %1088 = vst [vmem:[%s1822_s23 + $0x20] sm:$0xff] %v1080_v49  ;;  %v1073_v47 = vadd.f32 %v1065_v10, %v1676_v13  ;;  %v1066_v52 = vmul.f32 %v1053_v50, %v1769_v57 }
 0x64f   : > { %v1058_v8 = vpop.permute.xlu1 %1057 }
 0x650   : > { %v1081_v53 = vmax.f32 %v1073_v47, 0.0  ;;  %v1074_v12 = vadd.f32 %v1066_v52, %v1680_v15  ;;  %v1067_v54 = vmul.f32 %v1058_v8, %v1775_v60 }
 0x652   : > { %1089 = vst [vmem:[%s1822_s23 + $0x28] sm:$0xff] %v1081_v53  ;;  %v1082_v58 = vmax.f32 %v1074_v12, 0.0  ;;  %v1075_v55 = vadd.f32 %v1067_v54, %v1682_v16 }
 0x654   : > { %1090 = vst [vmem:[%s1822_s23 + $0x30] sm:$0xff] %v1082_v58  ;;  %v1083_v13 = vmax.f32 %v1075_v55, 0.0 }
 0x656   : > { %1091 = vst [vmem:[%s1822_s23 + $0x38] sm:$0xff] %v1083_v13 }
 0x657   : > { %1483 = shalt.err (!%p1480_p3)
}
 0x658   : > { %s1484_s22 = scalar_lea.hbm %s1846_s29, 1024  ;;  %s1488_s25 = scalar_lea.hbm %s1904_s9, 2048 }
 0x659   : > { %p1485_p4 = scmp.ne.s32.totalorder %s1846_s29, %s1484_s22  ;;  %p1489_p9 = scmp.lt.u32.totalorder %s1846_s29, %s1904_s9 }
 0x65a   : > { %p1490_p10 = scmp.lt.u32.totalorder %s1488_s25, %s1484_s22  ;;  %p1492_p12 = scmp.lt.u32.totalorder %s1484_s22, %s1846_s29 }
 0x65b   : > { %p1486_p7 = pnand %p1485_p4, %p1631_p5 }
 0x65c   : > { %p1491_p11 = por %p1490_p10, %p1489_p9 }
 0x65d   : > { %p1487_p8 = pneg %p1486_p7 }
 0x65e   : > { %p1493_p13 = por %p1492_p12, %p1491_p11 }
 0x660   : > { %p1494_p0 = pnand %p1493_p13, %p1487_p8 }
 0x662   : > { %1497 = shalt.err (!%p1494_p0)
}
 0x663   : > { %s1541_s14 = smov 128   ;;  %s1542_s16 = smov 8  }
 0x664   : > { %1361 = dma.vmem_to_hbm [thread:$0]  (%p1631_p5), %s1848_s26, 1024, %s1846_s29, %s1854_s13, %s1541_s14, %s1541_s14, %s1542_s16  }
 0x665 PF: > { %p1367_p1 = scmp.ge.s32.totalorder %s1532_s12, 2  ;;  %s1121_s17 = sand.u32 1, %s1520_s30  }
 0x666   : > { %s1122_s21 = scalar_lea.sflag [#allocation3], %s1121_s17 }
 0x667   : > { %p1364_p2 = pnand %p1367_p1, %p1635_p6 }
 0x669   : > { %1515 = dma.done.wait (!%p1364_p2), %s1122_s21, 1024  }
 0x66a   : > { %1517 = vsyncadd (!%p1364_p2), %s1122_s21, 4294966272  ;;  %p19_p3 = scmp.ge.s32.totalorder %s1618_s15, 4   ;;  %s1907_s30 = smov %s1524_s10 }
 0x66b   : > { %s1908_s10 = smov %s1528_s11  ;;  %s1909_s11 = smov %s1629_s18 }
 0x66c   : > { %s1910_s12 = smov %s1618_s15  ;;  %21 = sbr.rel (!%p19_p3) target bundleno = 3 (0x3), region = 91 }
 0x673   :  { %1127 = vsyncpa [#allocation3], 1 }
 0x674   :  { %1129 = vsyncpa [#allocation3 + $0x1], 1 }

</bundles_post_ra>
